<compile_context>
chip_gen: v7x
topology: tpu7x:2x2x1
jax: 0.10.0
libtpu: 0.0.40
codegen_flags: <defaults>
</compile_context>

<pallas_src>
import functools

import jax
import jax.numpy as jnp
from jax.experimental import pallas as pl
from jax.experimental.pallas import tpu as pltpu


# Explicit scoped-VMEM limit: above the 16/32 MiB defaults on v5e/v6e and
# comfortably under v7x's 64 MiB physical VMEM.
_VMEM_LIMIT_BYTES = 48 * 1024 * 1024
# Use the small-channel VPU path when the unrolled per-tile FMA count is tiny.
_VPU_CHANNEL_LIMIT = 64


def _vpu_kernel(x_ref, w_ref, b_ref, o_ref, *, c_in, c_out):
    """Small-channel path: VPU FMAs, weights/bias as SMEM scalars (no MXU).

    x_ref: (1, C_in, TP) VMEM
    w_ref: (C_out*C_in,) SMEM   (row-major W[co, ci])
    b_ref: (C_out,)      SMEM
    o_ref: (1, C_out, TP) VMEM
    """
    x = x_ref[0].astype(jnp.float32)              # (C_in, TP), lane-dense
    tp = x.shape[-1]
    rows = []
    for co in range(c_out):                       # statically unrolled
        acc = jnp.zeros((1, tp), jnp.float32) + b_ref[co]
        for ci in range(c_in):
            acc = acc + w_ref[co * c_in + ci] * x[ci:ci + 1, :]
        rows.append(acc)
    # Single lane-dense store of the whole (C_out, TP) tile.
    o_ref[0] = jnp.concatenate(rows, axis=0).astype(o_ref.dtype)


def _mxu_kernel(x_ref, w_ref, b_ref, o_ref):
    """Large-channel path: resident-weight MXU matmul, f32 accumulation.

    x_ref: (1, C_in, TP) VMEM; w_ref: (C_out, C_in) VMEM (input dtype, so bf16
    inputs stay bf16 into the MXU); b_ref: (C_out, 1) f32 VMEM.
    """
    acc = jnp.dot(w_ref[...], x_ref[0],
                  preferred_element_type=jnp.float32)      # (C_out, TP) f32
    o_ref[0] = (acc + b_ref[...]).astype(o_ref.dtype)


def _choose_pixel_tile(num_pixels, c_in, c_out, itemsize):
    """Largest lane-aligned pixel tile fitting a double-buffered pipeline."""
    p_pad128 = -(-num_pixels // 128) * 128
    per_pixel = 2 * (c_in + c_out) * itemsize      # 2 buffers each for in + out
    max_tp = (_VMEM_LIMIT_BYTES // 2 // per_pixel) // 128 * 128
    max_tp = max(128, min(max_tp, 32768))
    if p_pad128 <= max_tp:
        return p_pad128, p_pad128
    tp = max_tp
    return tp, -(-num_pixels // tp) * tp


def out_conv(x_nchw, weight, bias):
    """1x1 conv matching nn.Conv2d(in_channels, out_channels, kernel_size=1).

    x_nchw: (N, C_in, H, W)
    weight: (C_out, C_in, 1, 1)   (PyTorch layout)
    bias:   (C_out,)
    returns (N, C_out, H, W)
    """
    N, C_in, H, W = x_nchw.shape
    C_out = weight.shape[0]
    assert weight.shape == (C_out, C_in, 1, 1)
    P = H * W
    dtype = x_nchw.dtype
    itemsize = max(jnp.dtype(dtype).itemsize, 4)

    tp, p_pad = _choose_pixel_tile(P, C_in, C_out, itemsize)

    # Free reshape (merges the two contiguous trailing dims); pad pixels once
    # outside the hot loop only if H*W is not a 128 multiple.
    x = x_nchw.reshape(N, C_in, P)
    if p_pad != P:
        x = jnp.pad(x, ((0, 0), (0, 0), (0, p_pad - P)))

    grid = (N, p_pad // tp)
    x_spec = pl.BlockSpec((1, C_in, tp), lambda n, p: (n, 0, p))
    o_spec = pl.BlockSpec((1, C_out, tp), lambda n, p: (n, 0, p))
    out_shape = jax.ShapeDtypeStruct((N, C_out, p_pad), dtype)
    cparams = pltpu.CompilerParams(
        dimension_semantics=("parallel", "parallel"),
        vmem_limit_bytes=_VMEM_LIMIT_BYTES,
    )

    if C_in * C_out <= _VPU_CHANNEL_LIMIT:
        # Tiny channels: SMEM scalar weights + VPU FMAs (skip the MXU).
        w_flat = weight.reshape(C_out * C_in).astype(jnp.float32)
        b_vec = bias.astype(jnp.float32)
        kernel = functools.partial(_vpu_kernel, c_in=C_in, c_out=C_out)
        y = pl.pallas_call(
            kernel,
            out_shape=out_shape,
            grid_spec=pltpu.PrefetchScalarGridSpec(
                num_scalar_prefetch=0,
                grid=grid,
                in_specs=[
                    x_spec,
                    pl.BlockSpec(memory_space=pltpu.MemorySpace.SMEM),
                    pl.BlockSpec(memory_space=pltpu.MemorySpace.SMEM),
                ],
                out_specs=o_spec,
            ),
            compiler_params=cparams,
        )(x, w_flat, b_vec)
    else:
        # Larger channels: resident weight matrix on the MXU (constant
        # index_map -> weights stay in VMEM across all grid steps).
        w_mat = weight.reshape(C_out, C_in).astype(dtype)
        b_col = bias.reshape(C_out, 1).astype(jnp.float32)
        y = pl.pallas_call(
            _mxu_kernel,
            out_shape=out_shape,
            grid_spec=pltpu.PrefetchScalarGridSpec(
                num_scalar_prefetch=0,
                grid=grid,
                in_specs=[
                    x_spec,
                    pl.BlockSpec((C_out, C_in), lambda n, p: (0, 0)),
                    pl.BlockSpec((C_out, 1), lambda n, p: (0, 0)),
                ],
                out_specs=o_spec,
            ),
            compiler_params=cparams,
        )(x, w_mat, b_col)

    if p_pad != P:
        y = y[:, :, :P]
    return y.reshape(N, C_out, H, W)


if __name__ == "__main__":
    key = jax.random.PRNGKey(0)
    k_x, k_w, k_b, k_x2, k_w2, k_b2 = jax.random.split(key, 6)

    # Primary check: the module's typical tiny-channel config (VPU path).
    N, C_in, C_out, H, Wd = 2, 4, 3, 16, 16
    x = jax.random.normal(k_x, (N, C_in, H, Wd), dtype=jnp.float32)
    weight = jax.random.normal(k_w, (C_out, C_in, 1, 1), dtype=jnp.float32) * 0.1
    bias = jax.random.normal(k_b, (C_out,), dtype=jnp.float32) * 0.1

    y = out_conv(x, weight, bias)
    jax.block_until_ready(y)
    ref = (jnp.einsum("nchw,oc->nohw", x, weight.reshape(C_out, C_in))
           + bias.reshape(1, C_out, 1, 1))
    assert y.shape == (N, C_out, H, Wd)
    assert jnp.allclose(y, ref, atol=1e-5, rtol=1e-5)

    # Non-128-multiple spatial size (exercises the padding path).
    x_odd = jax.random.normal(k_x2, (1, C_in, 10, 10), dtype=jnp.float32)
    y_odd = out_conv(x_odd, weight, bias)
    jax.block_until_ready(y_odd)
    ref_odd = (jnp.einsum("nchw,oc->nohw", x_odd, weight.reshape(C_out, C_in))
               + bias.reshape(1, C_out, 1, 1))
    assert jnp.allclose(y_odd, ref_odd, atol=1e-5, rtol=1e-5)

    # Larger channel counts (exercises the MXU path).
    Ci2, Co2 = 48, 40
    x_big = jax.random.normal(k_x2, (1, Ci2, 8, 8), dtype=jnp.float32)
    w_big = jax.random.normal(k_w2, (Co2, Ci2, 1, 1), dtype=jnp.float32) * 0.1
    b_big = jax.random.normal(k_b2, (Co2,), dtype=jnp.float32) * 0.1
    y_big = out_conv(x_big, w_big, b_big)
    jax.block_until_ready(y_big)
    ref_big = (jnp.einsum("nchw,oc->nohw", x_big, w_big.reshape(Co2, Ci2))
               + b_big.reshape(1, Co2, 1, 1))
    assert jnp.allclose(y_big, ref_big, atol=1e-4, rtol=1e-4)

    print("KERNEL_OK")
</pallas_src>

<mosaic_0001>
module attributes {stable_mosaic.version = 11 : i64} {
  func.func @_vpu_kernel(%arg0: i32, %arg1: i32, %arg2: memref<1x4x256xf32, #tpu.memory_space<vmem>>, %arg3: memref<12xf32, #tpu.memory_space<smem>>, %arg4: memref<3xf32, #tpu.memory_space<smem>>, %arg5: memref<1x3x256xf32, #tpu.memory_space<vmem>>) attributes {dimension_semantics = [#tpu.dimension_semantics<parallel>, #tpu.dimension_semantics<parallel>], iteration_bounds = array<i64: 2, 1>, scalar_prefetch = 0 : i64, scratch_operands = 0 : i64, tpu.core_type = #tpu.core_type<tc>, window_params = [{transform_indices = @transform_0, window_bounds = array<i64: 1, 4, 256>}, {transform_indices = @transform_1, window_bounds = array<i64: 12>}, {transform_indices = @transform_2, window_bounds = array<i64: 3>}, {transform_indices = @transform_3, window_bounds = array<i64: 1, 3, 256>}]} {
    %c0 = arith.constant 0 : index
    %c0_0 = arith.constant 0 : index
    %c0_1 = arith.constant 0 : index
    %0 = vector.load %arg2[%c0, %c0_0, %c0_1] : memref<1x4x256xf32, #tpu.memory_space<vmem>>, vector<1x4x256xf32>
    %1 = vector.shape_cast %0 : vector<1x4x256xf32> to vector<4x256xf32>
    %cst = arith.constant 0.000000e+00 : f32
    %2 = vector.broadcast %cst : f32 to vector<1x256xf32>
    %c0_2 = arith.constant 0 : index
    %3 = memref.load %arg4[%c0_2] : memref<3xf32, #tpu.memory_space<smem>>
    %4 = vector.broadcast %3 : f32 to vector<1x256xf32>
    %5 = arith.addf %2, %4 : vector<1x256xf32>
    %c0_3 = arith.constant 0 : index
    %6 = memref.load %arg3[%c0_3] : memref<12xf32, #tpu.memory_space<smem>>
    %7 = vector.extract_strided_slice %1 {offsets = [0, 0], sizes = [1, 256], strides = [1, 1]} : vector<4x256xf32> to vector<1x256xf32>
    %8 = vector.broadcast %6 : f32 to vector<1x256xf32>
    %9 = arith.mulf %8, %7 : vector<1x256xf32>
    %10 = arith.addf %5, %9 : vector<1x256xf32>
    %c1 = arith.constant 1 : index
    %11 = memref.load %arg3[%c1] : memref<12xf32, #tpu.memory_space<smem>>
    %12 = vector.extract_strided_slice %1 {offsets = [1, 0], sizes = [1, 256], strides = [1, 1]} : vector<4x256xf32> to vector<1x256xf32>
    %13 = vector.broadcast %11 : f32 to vector<1x256xf32>
    %14 = arith.mulf %13, %12 : vector<1x256xf32>
    %15 = arith.addf %10, %14 : vector<1x256xf32>
    %c2 = arith.constant 2 : index
    %16 = memref.load %arg3[%c2] : memref<12xf32, #tpu.memory_space<smem>>
    %17 = vector.extract_strided_slice %1 {offsets = [2, 0], sizes = [1, 256], strides = [1, 1]} : vector<4x256xf32> to vector<1x256xf32>
    %18 = vector.broadcast %16 : f32 to vector<1x256xf32>
    %19 = arith.mulf %18, %17 : vector<1x256xf32>
    %20 = arith.addf %15, %19 : vector<1x256xf32>
    %c3 = arith.constant 3 : index
    %21 = memref.load %arg3[%c3] : memref<12xf32, #tpu.memory_space<smem>>
    %22 = vector.extract_strided_slice %1 {offsets = [3, 0], sizes = [1, 256], strides = [1, 1]} : vector<4x256xf32> to vector<1x256xf32>
    %23 = vector.broadcast %21 : f32 to vector<1x256xf32>
    %24 = arith.mulf %23, %22 : vector<1x256xf32>
    %25 = arith.addf %20, %24 : vector<1x256xf32>
    %cst_4 = arith.constant 0.000000e+00 : f32
    %26 = vector.broadcast %cst_4 : f32 to vector<1x256xf32>
    %c1_5 = arith.constant 1 : index
    %27 = memref.load %arg4[%c1_5] : memref<3xf32, #tpu.memory_space<smem>>
    %28 = vector.broadcast %27 : f32 to vector<1x256xf32>
    %29 = arith.addf %26, %28 : vector<1x256xf32>
    %c4 = arith.constant 4 : index
    %30 = memref.load %arg3[%c4] : memref<12xf32, #tpu.memory_space<smem>>
    %31 = vector.extract_strided_slice %1 {offsets = [0, 0], sizes = [1, 256], strides = [1, 1]} : vector<4x256xf32> to vector<1x256xf32>
    %32 = vector.broadcast %30 : f32 to vector<1x256xf32>
    %33 = arith.mulf %32, %31 : vector<1x256xf32>
    %34 = arith.addf %29, %33 : vector<1x256xf32>
    %c5 = arith.constant 5 : index
    %35 = memref.load %arg3[%c5] : memref<12xf32, #tpu.memory_space<smem>>
    %36 = vector.extract_strided_slice %1 {offsets = [1, 0], sizes = [1, 256], strides = [1, 1]} : vector<4x256xf32> to vector<1x256xf32>
    %37 = vector.broadcast %35 : f32 to vector<1x256xf32>
    %38 = arith.mulf %37, %36 : vector<1x256xf32>
    %39 = arith.addf %34, %38 : vector<1x256xf32>
    %c6 = arith.constant 6 : index
    %40 = memref.load %arg3[%c6] : memref<12xf32, #tpu.memory_space<smem>>
    %41 = vector.extract_strided_slice %1 {offsets = [2, 0], sizes = [1, 256], strides = [1, 1]} : vector<4x256xf32> to vector<1x256xf32>
    %42 = vector.broadcast %40 : f32 to vector<1x256xf32>
    %43 = arith.mulf %42, %41 : vector<1x256xf32>
    %44 = arith.addf %39, %43 : vector<1x256xf32>
    %c7 = arith.constant 7 : index
    %45 = memref.load %arg3[%c7] : memref<12xf32, #tpu.memory_space<smem>>
    %46 = vector.extract_strided_slice %1 {offsets = [3, 0], sizes = [1, 256], strides = [1, 1]} : vector<4x256xf32> to vector<1x256xf32>
    %47 = vector.broadcast %45 : f32 to vector<1x256xf32>
    %48 = arith.mulf %47, %46 : vector<1x256xf32>
    %49 = arith.addf %44, %48 : vector<1x256xf32>
    %cst_6 = arith.constant 0.000000e+00 : f32
    %50 = vector.broadcast %cst_6 : f32 to vector<1x256xf32>
    %c2_7 = arith.constant 2 : index
    %51 = memref.load %arg4[%c2_7] : memref<3xf32, #tpu.memory_space<smem>>
    %52 = vector.broadcast %51 : f32 to vector<1x256xf32>
    %53 = arith.addf %50, %52 : vector<1x256xf32>
    %c8 = arith.constant 8 : index
    %54 = memref.load %arg3[%c8] : memref<12xf32, #tpu.memory_space<smem>>
    %55 = vector.extract_strided_slice %1 {offsets = [0, 0], sizes = [1, 256], strides = [1, 1]} : vector<4x256xf32> to vector<1x256xf32>
    %56 = vector.broadcast %54 : f32 to vector<1x256xf32>
    %57 = arith.mulf %56, %55 : vector<1x256xf32>
    %58 = arith.addf %53, %57 : vector<1x256xf32>
    %c9 = arith.constant 9 : index
    %59 = memref.load %arg3[%c9] : memref<12xf32, #tpu.memory_space<smem>>
    %60 = vector.extract_strided_slice %1 {offsets = [1, 0], sizes = [1, 256], strides = [1, 1]} : vector<4x256xf32> to vector<1x256xf32>
    %61 = vector.broadcast %59 : f32 to vector<1x256xf32>
    %62 = arith.mulf %61, %60 : vector<1x256xf32>
    %63 = arith.addf %58, %62 : vector<1x256xf32>
    %c10 = arith.constant 10 : index
    %64 = memref.load %arg3[%c10] : memref<12xf32, #tpu.memory_space<smem>>
    %65 = vector.extract_strided_slice %1 {offsets = [2, 0], sizes = [1, 256], strides = [1, 1]} : vector<4x256xf32> to vector<1x256xf32>
    %66 = vector.broadcast %64 : f32 to vector<1x256xf32>
    %67 = arith.mulf %66, %65 : vector<1x256xf32>
    %68 = arith.addf %63, %67 : vector<1x256xf32>
    %c11 = arith.constant 11 : index
    %69 = memref.load %arg3[%c11] : memref<12xf32, #tpu.memory_space<smem>>
    %70 = vector.extract_strided_slice %1 {offsets = [3, 0], sizes = [1, 256], strides = [1, 1]} : vector<4x256xf32> to vector<1x256xf32>
    %71 = vector.broadcast %69 : f32 to vector<1x256xf32>
    %72 = arith.mulf %71, %70 : vector<1x256xf32>
    %73 = arith.addf %68, %72 : vector<1x256xf32>
    %74 = tpu.concatenate %25, %49, %73 in 0 : vector<1x256xf32>, vector<1x256xf32>, vector<1x256xf32> -> vector<3x256xf32>
    %c0_8 = arith.constant 0 : index
    %c0_9 = arith.constant 0 : index
    %c0_10 = arith.constant 0 : index
    %75 = vector.load %arg5[%c0_8, %c0_9, %c0_10] : memref<1x3x256xf32, #tpu.memory_space<vmem>>, vector<1x3x256xf32>
    %76 = vector.shape_cast %75 : vector<1x3x256xf32> to vector<3x256xf32>
    %77 = vector.shape_cast %74 : vector<3x256xf32> to vector<1x3x256xf32>
    tpu.vector_store %arg5[%c0_8, %c0_9, %c0_10], %77 {strides = array<i32>} : memref<1x3x256xf32, #tpu.memory_space<vmem>>, vector<1x3x256xf32>,
    return
  }
  func.func @transform_0(%arg0: i32, %arg1: i32) -> (i32, i32, i32) {
    %c0_i32 = arith.constant 0 : i32
    %c0_i32_0 = arith.constant 0 : i32
    return %arg0, %c0_i32, %arg1 : i32, i32, i32
  }
  func.func @transform_1(%arg0: i32, %arg1: i32) -> i32 {
    %c0_i32 = arith.constant 0 : i32
    %c0_i32_0 = arith.constant 0 : i32
    return %c0_i32 : i32
  }
  func.func @transform_2(%arg0: i32, %arg1: i32) -> i32 {
    %c0_i32 = arith.constant 0 : i32
    %c0_i32_0 = arith.constant 0 : i32
    return %c0_i32 : i32
  }
  func.func @transform_3(%arg0: i32, %arg1: i32) -> (i32, i32, i32) {
    %c0_i32 = arith.constant 0 : i32
    %c0_i32_0 = arith.constant 0 : i32
    return %arg0, %c0_i32, %arg1 : i32, i32, i32
  }
}

</mosaic_0001>

<bundles_post_ra>
// kernel: tpu_custom_call.1
= control target key start
LH: loop header
LB: loop body
LE: loop exit
PB: predicated region body
PF: predicated region fallthrough
CT: control target
= control target key end

     0   :  { %8 = vsyncpa [#allocation3], 0  ;;  %s940_s0 = inlined_call_operand.hbm [shape: f32[2,4,256], index: 0, kind: input, shape index: {}]   ;;  %s941_s1 = inlined_call_operand.vmem [shape: f32[12], index: 1, kind: input, shape index: {}]   ;;  %s942_s2 = inlined_call_operand.vmem [shape: f32[3], index: 2, kind: input, shape index: {}]   ;;  %s943_s3 = inlined_call_operand.vmem [shape: f32[2,3,256], index: 3, kind: output, shape index: {}]  }
   0x1   :  { %10 = vsyncpa [#allocation3 + $0x1], 0 }
   0x2   :  { %11 = vsyncpa [#allocation4], 0 }
   0x3   :  { %12 = vsyncpa [#allocation7], 0  ;;  %s759_s12 = smov 0   ;;  %s761_s13 = smov 0  }
   0x4   :  { %s763_s14 = smov 0   ;;  %s765_s15 = smov 0  }
   0x5   :  { %s767_s16 = smov 0   ;;  %s769_s17 = smov 0  }
   0x6 LB: > { %s499_s18 = sadd.s32 4294967295, %s734_s17   ;;  %p52_p0 = scmp.ne.s32.totalorder %s718_s13, %s714_s12  ;;  %s734_s17 = sphi %s769_s17, %s18_s17   ;;  %s730_s16 = sphi %s767_s16, %s961_s16   ;;  %s726_s15 = sphi %s765_s15, %s960_s15   ;;  %s722_s14 = sphi %s763_s14, %s959_s14   ;;  %s718_s13 = sphi %s761_s13, %s958_s13   ;;  %s714_s12 = sphi %s759_s12, %s957_s12  }
   0x7   : > { %p789_p1 = scmp.eq.s32.totalorder %s499_s18, 0  ;;  %p501_p2 = scmp.ge.s32.totalorder %s734_s17, 1 }
   0x8   : > { %p133_p3 = scmp.lt.s32.totalorder %s734_s17, 3  ;;  %s146_s23 = sshll.u32 %s941_s1, 4  ;;  %s147_s23 = int_to_ptr.vmem [resolvable:$true] %s146_s23 }
   0x9   : > { %s948_s19 = scalar_select %p789_p1, 1, 0 }
   0xa   : > { %p797_p4 = por %p789_p1, %p52_p0  ;;  %p804_p5 = pnand %p501_p2, %p133_p3 }
   0xb   : > { %s157_s27 = sshll.u32 %s942_s2, 4  ;;  %s616_s29 = scalar_lea.vmem %s147_s23, 16  ;;  %s158_s27 = int_to_ptr.vmem [resolvable:$true] %s157_s27 }
   0xc   : > { %s949_s20 = scalar_select %p797_p4, 1, 0 }
   0xd   : > { %s950_s24 = scalar_select %p804_p5, 1, 0 }
   0xe   : > { %p550_p6 = pneg %p804_p5  ;;  %p617_p8 = scmp.ne.s32.totalorder %s147_s23, %s616_s29 }
   0xf   : > { %p624_p12 = scmp.lt.s32.totalorder %s147_s23, %s147_s23  ;;  %p625_p13 = scmp.lt.s32.totalorder %s616_s29, %s616_s29 }
  0x10   : > { %p815_p7 = pnand %p550_p6, %p789_p1 }
  0x11   : > { %p626_p0 = por %p625_p13, %p624_p12 }
  0x12   : > { %p618_p9 = pneg %p815_p7 }
  0x14   : > { %p619_p10 = pnand %p618_p9, %p617_p8 }
  0x16   : > { %p620_p11 = pneg %p619_p10 }
  0x18   : > { %p627_p2 = pnand %p626_p0, %p620_p11 }
  0x1a   : > { %630 = shalt.err (!%p627_p2)
}
  0x1b   : > { %s736_s30 = smov [#allocation5]   ;;  %s631_s4 = scalar_lea.vmem %s158_s27, 16 }
  0x1c   : > { %553 = dma.vmem_to_smem (!%p815_p7), %s147_s23, 16, %s736_s30, [#allocation4]  }
  0x1d   : > { %p632_p3 = scmp.ne.s32.totalorder %s158_s27, %s631_s4  ;;  %p639_p4 = scmp.lt.s32.totalorder %s158_s27, %s158_s27 }
  0x1e   : > { %p640_p5 = scmp.lt.s32.totalorder %s631_s4, %s631_s4 }
  0x1f   : > { %p634_p6 = pnand %p632_p3, %p618_p9 }
  0x20   : > { %p641_p8 = por %p640_p5, %p639_p4 }
  0x21   : > { %p635_p1 = pneg %p634_p6 }
  0x23   : > { %p642_p10 = pnand %p641_p8, %p635_p1 }
  0x25   : > { %645 = shalt.err (!%p642_p10)
}
  0x26   : > { %s737_s5 = smov [#allocation6]   ;;  %s30_s6 = sadd.s32 1, %s730_s16 }
  0x27   : > { %556 = dma.vmem_to_smem (!%p815_p7), %s158_s27, 16, %s737_s5, [#allocation7]  }
  0x28   : > { %s39_s7 = sadd.s32 1, %s722_s14  ;;  %p32_p9 = scmp.ge.s32.totalorder %s30_s6, 2 }
  0x29   : > { %p46_p1 = scmp.ne.s32.totalorder %s722_s14, %s718_s13  ;;  %p47_p4 = scmp.eq.s32.totalorder %s734_s17, 0 }
  0x2a   : > { %p563_p5 = scmp.lt.s32.totalorder %s734_s17, 2  ;;  %s963_s6 = smov (%p32_p9, %s30_s6), 0 }
  0x2b   : > { %p48_p11 = por %p47_p4, %p46_p1  ;;  %s168_s8 = sand.u32 1, %s722_s14  }
  0x2c   : > { %s34_s9 = ssub.s32 %s730_s16, %s963_s6  ;;  %s505_s10 = sshll.u32 %s168_s8, 3 }
  0x2d   : > { %p37_p12 = scmp.eq.s32.totalorder %s34_s9, 0  ;;  %s538_s11 = sshll.u32 %s730_s16, 7 }
  0x2e   : > { %s843_s22 = scalar_lea.hbm %s940_s0, %s538_s11  ;;  %s172_s23 = scalar_lea.vmem [#allocation2], %s505_s10 }
  0x2f   : > { %s838_s12 = scalar_select %p37_p12, %s722_s14, %s39_s7  }
  0x30   : > { %s182_s25 = sshll.u32 %s172_s23, 4  ;;  %p849_p7 = pnand %p563_p5, %p48_p11  ;;  %s845_s25 = int_to_ptr.vmem [resolvable:$true] %s182_s25 }
  0x31   : > { %s169_s27 = scalar_lea.sflag [#allocation3], %s168_s8  ;;  %s646_s28 = scalar_lea.hbm %s843_s22, 128 }
  0x32   : > { %p647_p13 = scmp.ne.s32.totalorder %s843_s22, %s646_s28  ;;  %p648_p0 = pneg %p849_p7 }
  0x33   : > { %s651_s4 = scalar_lea.hbm %s940_s0, 256  ;;  %p652_p6 = scmp.lt.u32.totalorder %s843_s22, %s940_s0 }
  0x34   : > { %p649_p2 = pnand %p648_p0, %p647_p13  ;;  %p653_p8 = scmp.lt.u32.totalorder %s651_s4, %s646_s28 }
  0x35   : > { %p655_p9 = scmp.lt.u32.totalorder %s646_s28, %s843_s22 }
  0x36   : > { %p650_p3 = pneg %p649_p2  ;;  %p654_p10 = por %p653_p8, %p652_p6 }
  0x38   : > { %p656_p1 = por %p655_p9, %p654_p10 }
  0x3a   : > { %p657_p4 = pnand %p656_p1, %p650_p3 }
  0x3c   : > { %660 = shalt.err (!%p657_p4)
}
  0x3d   : > { %s661_s8 = scalar_lea.vmem %s845_s25, 128  ;;  %s738_s9 = smov [#allocation2]  }
  0x3e   : > { %p662_p5 = scmp.ne.s32.totalorder %s845_s25, %s661_s8  ;;  %s666_s10 = sshll.u32 %s738_s9, 4  ;;  %s667_s10 = int_to_ptr.vmem [resolvable:$false] %s666_s10 }
  0x3f   : > { %s668_s11 = scalar_lea.vmem %s667_s10, 256  ;;  %p669_p13 = scmp.lt.s32.totalorder %s845_s25, %s667_s10 }
  0x40   : > { %p664_p11 = pnand %p662_p5, %p648_p0  ;;  %p670_p2 = scmp.lt.s32.totalorder %s668_s11, %s661_s8 }
  0x42   : > { %p665_p12 = pneg %p664_p11  ;;  %p671_p6 = por %p670_p2, %p669_p13 }
  0x44   : > { %p672_p8 = pnand %p671_p6, %p665_p12 }
  0x46   : > { %675 = shalt.err (!%p672_p8)
}
  0x47   : > { %560 = dma.hbm_to_vmem [thread:$0]  (!%p849_p7), %s843_s22, 128, %s845_s25, %s169_s27  }
  0x48   : > { %p953_p3 = scmp.ne.s32.totalorder %s950_s24, 0 }
  0x49   : > { %s193_s18 = sand.u32 (!%p953_p3), 1, %s718_s13   ;;  %p954_p0 = scmp.ne.s32.totalorder (!%p953_p3), %s949_s20, 0 }
  0x4a   : > { %191 = sbr.rel (%p953_p3) target bundleno = 119 (0x77), region = 32  ;;  %s509_s21 = sshll.u32 (!%p953_p3), %s193_s18, 3 }
  0x4b   : > { %s194_s23 = scalar_lea.sflag (!%p953_p3), [#allocation3], %s193_s18  ;;  %s197_s28 = scalar_lea.vmem (!%p953_p3), [#allocation2], %s509_s21 }
  0x51   : > { %701 = dma.done.wait (%p954_p0), %s194_s23, 128  }
  0x52   : > { %703 = vsyncadd (%p954_p0), %s194_s23, 4294967168  ;;  %p955_p10 = scmp.ne.s32.totalorder %s948_s19, 0 }
  0x54   : > { %705 = dma.done.wait (%p955_p10), [#allocation4], 16  }
  0x55   : > { %707 = vsyncadd (%p955_p10), [#allocation4], 4294967280 }
  0x56   : > { %709 = dma.done.wait (%p955_p10), [#allocation7], 16  }
  0x57   : > { %711 = vsyncadd (%p955_p10), [#allocation7], 4294967280 }
  0x58   : > { %210 = sfence }
  0x59   : > { %s245_s24 = sld [smem:[#allocation6]]  ;;  %s514_s25 = sld [smem:[#allocation5 + $0x1]]  ;;  %v339_v0 = vlaneseq  ;;  %v244_v1 = vld [vmem:[%s197_s28] sm:$0xff]  ;;  %vm371_vm0 = vcmask 1040384   ;;  %vm374_vm1 = vcmask 1041408  }
  0x5a   : > { %s248_s22 = sld [smem:[#allocation5]]  ;;  %s516_s26 = sld [smem:[#allocation5 + $0x2]] }
  0x5b   : > { %s518_s27 = sld [smem:[#allocation5 + $0x3]]  ;;  %s893_s20 = sld [smem:[#allocation6 + $0x1]]  ;;  %v340_v5 = vshrl.u32 %v339_v0, 7 }
  0x5c   : > { %s521_s29 = sld [smem:[#allocation5 + $0x4]]  ;;  %s895_s30 = sld [smem:[#allocation5 + $0x5]] }
  0x5d   : > { %s897_s4 = sld [smem:[#allocation5 + $0x6]]  ;;  %s526_s19 = sld [smem:[#allocation5 + $0x7]]  ;;  %v341_v16 = vsub.s32 0, %v340_v5  ;;  %v345_v36 = vsub.s32 4, %v340_v5 }
  0x5e   : > { %s899_s5 = sld [smem:[#allocation6 + $0x2]]  ;;  %s901_s7 = sld [smem:[#allocation5 + $0x8]] }
  0x5f   : > { %v246_v2 = vstv %s245_s24  ;;  %v253_v4 = vstv %s514_s25  ;;  %s903_s8 = sld [smem:[#allocation5 + $0x9]]  ;;  %s905_s9 = sld [smem:[#allocation5 + $0xa]] }
  0x60   : > { %v249_v3 = vstv %s248_s22  ;;  %v254_v7 = vmul.f32 %v253_v4, %v244_v1  ;;  %v261_v8 = vstv %s516_s26  ;;  %s907_s10 = sld [smem:[#allocation5 + $0xb]]  ;;  %p235_p7 = scmp.lt.s32.totalorder %s726_s15, 1 }
  0x61   : > { %v250_v6 = vmul.f32 %v249_v3, %v244_v1  ;;  %v269_v9 = vstv %s518_s27  ;;  %v262_v12 = vmul.f32 %v261_v8, %v244_v1  ;;  %v277_v14 = vstv %s893_s20 }
  0x62   : > { %v515_v11 = vrot.slane %v254_v7, 9  ;;  %v270_v13 = vmul.f32 %v269_v9, %v244_v1  ;;  %v280_v15 = vstv %s521_s29  ;;  %v284_v21 = vstv %s895_s30  ;;  %s965_s15 = smov (!%p235_p7, %s726_s15), 1 }
  0x63   : > { %v251_v10 = vadd.f32 %v250_v6, %v246_v2  ;;  %v517_v18 = vrot.slane %v262_v12, 10  ;;  %v281_v20 = vmul.f32 %v280_v15, %v244_v1  ;;  %v292_v22 = vstv %s897_s4  ;;  %s539_s11 = sshll.u32 %s965_s15, 3 }
  0x64   : > { %v519_v19 = vrot.slane %v270_v13, 11  ;;  %v300_v23 = vstv %s526_s19  ;;  %v308_v24 = vstv %s899_s5  ;;  %v285_v27 = vmul.f32 %v284_v21, %v244_v1  ;;  %s242_s23 = scalar_lea.vmem %s943_s3, %s539_s11 }
  0x65   : > { %v259_v17 = vadd.f32 %v515_v11, %v251_v10  ;;  %v282_v26 = vadd.f32 %v281_v20, %v277_v14  ;;  %v293_v28 = vmul.f32 %v292_v22, %v244_v1  ;;  %v301_v29 = vmul.f32 %v300_v23, %v244_v1 }
  0x66   : > { %v311_v30 = vstv %s901_s7  ;;  %v315_v31 = vstv %s903_s8  ;;  %v323_v32 = vstv %s905_s9  ;;  %v523_v33 = vrot.slane %v285_v27, 9 }
  0x67   : > { %v267_v25 = vadd.f32 %v517_v18, %v259_v17  ;;  %v525_v34 = vrot.slane %v293_v28, 10  ;;  %v312_v35 = vmul.f32 %v311_v30, %v244_v1  ;;  %v316_v38 = vmul.f32 %v315_v31, %v244_v1 }
  0x68   : > { %v324_v39 = vmul.f32 %v323_v32, %v244_v1  ;;  %v331_v40 = vstv %s907_s10  ;;  %v290_v41 = vadd.f32 %v523_v33, %v282_v26  ;;  %v527_v42 = vrot.slane %v301_v29, 11 }
  0x69   : > { %v275_v37 = vadd.f32 %v519_v19, %v267_v25  ;;  %v313_v43 = vadd.f32 %v312_v35, %v308_v24  ;;  %v332_v44 = vmul.f32 %v331_v40, %v244_v1  ;;  %v531_v45 = vrot.slane %v316_v38, 9 }
  0x6a   : > { %v533_v46 = vrot.slane %v324_v39, 10  ;;  %v298_v47 = vadd.f32 %v525_v34, %v290_v41 }
  0x6b   : > { %v321_v48 = vadd.f32 %v531_v45, %v313_v43  ;;  %v535_v49 = vrot.slane %v332_v44, 11  ;;  %v342_v51 = vrot.slane %v275_v37, %v341_v16  ;;  %v346_v52 = vrot.slane %v275_v37, %v345_v36 }
  0x6c   : > { %v306_v50 = vadd.f32 %v527_v42, %v298_v47 }
  0x6d   : > { %v329_v53 = vadd.f32 %v533_v46, %v321_v48 }
  0x6e   : > { %v353_v54 = vrot.slane %v306_v50, %v341_v16  ;;  %v357_v55 = vrot.slane %v306_v50, %v345_v36 }
  0x6f   : > { %v337_v56 = vadd.f32 %v535_v49, %v329_v53 }
  0x70   : > { %v372_v57 = vsel %vm371_vm0, %v342_v51, %v353_v54  ;;  %v373_v58 = vsel %vm371_vm0, %v346_v52, %v357_v55 }
  0x71   : > { %v364_v59 = vrot.slane %v337_v56, %v341_v16  ;;  %v368_v60 = vrot.slane %v337_v56, %v345_v36 }
  0x73   : > { %v375_v61 = vsel %vm374_vm1, %v372_v57, %v364_v59  ;;  %v376_v62 = vsel %vm374_vm1, %v373_v58, %v368_v60 }
  0x74   : > { %v379_v63 = vcombine.low %v375_v61, %v376_v62 }
  0x76   : > { %381 = vst [vmem:[%s242_s23] sm:$0x77] %v379_v63 }
  0x77 PF: > { %s18_s17 = sadd.s32 1, %s734_s17   ;;  %s956_s15 = smov %s838_s12 }
  0x78   : > { %p15_p9 = scmp.ge.s32.totalorder %s18_s17, 4   ;;  %s957_s12 = smov %s718_s13 }
  0x79   : > { %s958_s13 = smov %s722_s14  ;;  %s959_s14 = smov %s956_s15 }
  0x7a   : > { %s960_s15 = smov %s730_s16  ;;  %s961_s16 = smov %s963_s6 }
  0x7b   :  { %17 = sbr.rel (!%p15_p9) target bundleno = 6 (0x6), region = 81 }
  0x82   :  { %412 = vsyncpa [#allocation3], 1 }
  0x83   :  { %414 = vsyncpa [#allocation3 + $0x1], 1 }
  0x84   :  { %415 = vsyncpa [#allocation4], 1 }
  0x85   :  { %417 = vsyncpa [#allocation4 + $0x1], 1 }
  0x86   :  { %418 = vsyncpa [#allocation7], 1 }

</bundles_post_ra>
